<compile_context>
chip_gen: v7x
topology: tpu7x:2x2x1
jax: 0.10.0
libtpu: 0.0.40
codegen_flags: <defaults>
</compile_context>

<pallas_src>
import functools
import math

import jax
import jax.numpy as jnp
from jax.experimental import pallas as pl
from jax.experimental.pallas import tpu as pltpu


# ----------------------------------------------------------------------------
# Pallas kernel: Bb batch elements per grid step, fully fused.
# ----------------------------------------------------------------------------
def _temporal_attention_kernel(x_ref, w_ref, b_ref, o_ref, *scratch,
                               inv_sqrt_d: float, t_valid: int, h_valid: int,
                               needs_pad: bool, mm_dtype):
    if needs_pad:
        xp_ref, = scratch
        # Zero the padded staging tile, then drop the unpadded x block into its
        # top-left corner.  Padded hidden columns / key rows are exactly zero,
        # so they contribute nothing to Q.K^T or attn@V.
        xp_ref[...] = jnp.zeros_like(xp_ref)
        xp_ref[:, :t_valid, :h_valid] = x_ref[...]
        x = xp_ref[...].astype(mm_dtype)            # (Bb, Tp, Hp) bf16 operand
    else:
        x = x_ref[...].astype(mm_dtype)

    bb, tp, hp = x.shape
    w = w_ref[...]                                   # (Hp, Hp), already mm_dtype

    # ---- Q = x @ W as ONE big MXU matmul over all Bb*Tp rows. ---------------
    q = jnp.dot(x.reshape(bb * tp, hp), w, preferred_element_type=jnp.float32)

    # Apply 1/sqrt(d) to whichever of Q (Tp x Hp) or scores (Tp x Tp) is
    # smaller (static trace-time choice); constant multiply, never a divide.
    scale_q = hp <= tp
    if scale_q:
        q = q * inv_sqrt_d
    q = q.reshape(bb, tp, hp).astype(mm_dtype)

    # ---- scores = Q @ K^T (K = x), batched over Bb, f32 accumulation. -------
    scores = jnp.einsum("btd,bsd->bts", q, x,
                        preferred_element_type=jnp.float32)
    if not scale_q:
        scores = scores * inv_sqrt_d

    if t_valid != tp:
        # Mask padded key positions (their raw scores are exactly 0 otherwise).
        key_ids = jax.lax.broadcasted_iota(jnp.int32, scores.shape, 2)
        scores = jnp.where(key_ids < t_valid, scores, -1e30)

    # ---- softmax over keys (f32); denominator reciprocal rides the EUP. -----
    scores = scores - jnp.max(scores, axis=-1, keepdims=True)
    p = jnp.exp(scores)
    denom = jnp.sum(p, axis=-1, keepdims=True)
    attn = p * pl.reciprocal(denom, approx=True)

    # ---- context = attn @ V (V = x), bias broadcast, f32 output. ------------
    ctx = jnp.einsum("bts,bsd->btd", attn.astype(mm_dtype), x,
                     preferred_element_type=jnp.float32)
    o_ref[...] = ctx + b_ref[...]


# ----------------------------------------------------------------------------
# Wrapper.
# ----------------------------------------------------------------------------
def _round_up(v: int, m: int) -> int:
    return ((v + m - 1) // m) * m


def _choose_batch_block(B: int, Tp: int, Hp: int) -> int:
    # Enough rows per step to fill the MXU M dimension (>=256), capped so the
    # double-buffered x/out blocks stay well inside scoped VMEM, and capped so
    # the grid keeps >=2 steps when B >= 2 (both v7x TensorCores get work).
    rows_target = max(1, pl.cdiv(256, Tp))
    vmem_cap = max(1, (4 * 1024 * 1024) // (Tp * Hp * 4))
    bb = max(1, min(B, rows_target, vmem_cap))
    if B >= 2:
        bb = min(bb, max(1, B // 2))
    while B % bb:          # keep the grid exact (no partial batch blocks)
        bb -= 1
    return bb


def temporal_attention(x, att_weight, bias, *, matmul_dtype=jnp.bfloat16):
    """x: (B, T, H); att_weight: (H, H); bias: (H,) -> (B, T, H) float32."""
    B, T, H = x.shape
    Tp = _round_up(T, 8)          # sublane multiple
    Hp = _round_up(H, 128)        # lane multiple -> dense compute & unmasked vst
    needs_pad = (Tp, Hp) != (T, H)

    x = x.astype(jnp.float32)     # no-op when already f32; x is NOT padded here
    # Parameters are tiny and grid-resident: pad/cast them once in the wrapper.
    w = att_weight.astype(matmul_dtype)
    b = bias.astype(jnp.float32)
    if needs_pad:
        w = jnp.pad(w, ((0, Hp - H), (0, Hp - H)))
        b = jnp.pad(b, (0, Hp - H))
    b = b.reshape(1, Hp)

    Bb = _choose_batch_block(B, Tp, Hp)
    grid = (B // Bb,)

    # Single-buffer the resident weight/bias only once double-buffering waste
    # is material (>= ~1 MiB); at small Hp it is negligible and skipping the
    # override keeps the common path identical to the known-good pipeline.
    resident_kwargs = {}
    if Hp >= 512:
        resident_kwargs = dict(pipeline_mode=pl.Buffered(1))

    kernel = functools.partial(
        _temporal_attention_kernel,
        inv_sqrt_d=float(1.0 / math.sqrt(H)),   # scale uses the TRUE hidden dim
        t_valid=T,
        h_valid=H,
        needs_pad=needs_pad,
        mm_dtype=matmul_dtype,
    )

    # Scoped-VMEM budget: double-buffered x/out blocks + resident params +
    # padded-x scratch, with 2x headroom for compiler-managed values
    # (scores/attn).  Clamped to [32 MiB, 64 MiB] (v7x physical VMEM is 64 MiB).
    mm_itemsize = jnp.dtype(matmul_dtype).itemsize
    x_blk = Bb * T * H * 4
    o_blk = Bb * Tp * Hp * 4
    scr = Bb * Tp * Hp * 4 if needs_pad else 0
    w_bufs = 1 if resident_kwargs else 2
    need = 2 * x_blk + 2 * o_blk + scr + w_bufs * Hp * Hp * mm_itemsize + 2 * Hp * 4
    vmem_limit = int(min(64 * 1024 * 1024, max(32 * 1024 * 1024, 2 * need)))

    out_p = pl.pallas_call(
        kernel,
        out_shape=jax.ShapeDtypeStruct((B, Tp, Hp), jnp.float32),
        grid=grid,
        in_specs=[
            # x: unpadded block; last two dims equal the full array dims
            # (allowed by the (8,128) rule), so no wrapper-side pad traffic.
            pl.BlockSpec((Bb, T, H), lambda i: (i, 0, 0)),
            pl.BlockSpec((Hp, Hp), lambda i: (0, 0), **resident_kwargs),   # W resident
            pl.BlockSpec((1, Hp), lambda i: (0, 0), **resident_kwargs),    # bias resident
        ],
        out_specs=pl.BlockSpec((Bb, Tp, Hp), lambda i: (i, 0, 0)),
        scratch_shapes=(
            [pltpu.VMEM((Bb, Tp, Hp), jnp.float32)] if needs_pad else []
        ),
        compiler_params=pltpu.CompilerParams(
            dimension_semantics=("parallel",),          # megacore on v7x
            vmem_limit_bytes=vmem_limit,
        ),
    )(x, w, b)

    if needs_pad:
        return out_p[:, :T, :H]
    return out_p


# ----------------------------------------------------------------------------
if __name__ == "__main__":
    B, T, H = 2, 16, 32     # (batch, seq, hidden_dim) as the forward implies

    key = jax.random.PRNGKey(0)
    k_x, k_w = jax.random.split(key)

    x = jax.random.normal(k_x, (B, T, H), jnp.float32)

    # Parameters initialized like the PyTorch module (xavier_uniform weight, zero bias).
    limit = math.sqrt(6.0 / (H + H))
    att_weight = jax.random.uniform(k_w, (H, H), jnp.float32, -limit, limit)
    bias = jnp.zeros((H,), jnp.float32)

    out = jax.block_until_ready(temporal_attention(x, att_weight, bias))

    # Pure-JAX reference of the PyTorch forward (f32).
    q = x @ att_weight
    scores = jnp.einsum("btd,bsd->bts", q, x) / jnp.sqrt(jnp.float32(H))
    attn = jax.nn.softmax(scores, axis=-1)
    ref = jnp.einsum("bts,bsd->btd", attn, x) + bias[None, None, :]

    assert out.shape == (B, T, H) and out.dtype == jnp.float32
    assert bool(jnp.all(jnp.isfinite(out)))
    assert bool(jnp.allclose(out, ref, atol=5e-2, rtol=5e-2))
    print("KERNEL_OK")
</pallas_src>

<mosaic_0001>
module attributes {stable_mosaic.version = 11 : i64} {
  func.func @_temporal_attention_kernel(%arg0: i32, %arg1: memref<1x16x32xf32, #tpu.memory_space<vmem>>, %arg2: memref<128x128xbf16, #tpu.memory_space<vmem>>, %arg3: memref<1x128xf32, #tpu.memory_space<vmem>>, %arg4: memref<1x16x128xf32, #tpu.memory_space<vmem>>, %arg5: memref<1x16x128xf32, #tpu.memory_space<vmem>>) attributes {dimension_semantics = [#tpu.dimension_semantics<parallel>], iteration_bounds = array<i64: 2>, scalar_prefetch = 0 : i64, scratch_operands = 1 : i64, tpu.core_type = #tpu.core_type<tc>, window_params = [{transform_indices = @transform_0, window_bounds = array<i64: 1, 16, 32>}, {pipeline_mode = #tpu.pipeline_mode<synchronous>, transform_indices = @transform_1, window_bounds = array<i64: 128, 128>}, {pipeline_mode = #tpu.pipeline_mode<synchronous>, transform_indices = @transform_2, window_bounds = array<i64: 1, 128>}, {transform_indices = @transform_3, window_bounds = array<i64: 1, 16, 128>}]} {
    %cst = arith.constant 0.000000e+00 : f32
    %0 = vector.broadcast %cst : f32 to vector<1x16x128xf32>
    %c0 = arith.constant 0 : index
    %c0_0 = arith.constant 0 : index
    %c0_1 = arith.constant 0 : index
    %1 = vector.load %arg5[%c0, %c0_0, %c0_1] : memref<1x16x128xf32, #tpu.memory_space<vmem>>, vector<1x16x128xf32>
    tpu.vector_store %arg5[%c0, %c0_0, %c0_1], %0 {strides = array<i32>} : memref<1x16x128xf32, #tpu.memory_space<vmem>>, vector<1x16x128xf32>,
    %c0_2 = arith.constant 0 : index
    %c0_3 = arith.constant 0 : index
    %c0_4 = arith.constant 0 : index
    %2 = vector.load %arg1[%c0_2, %c0_3, %c0_4] : memref<1x16x32xf32, #tpu.memory_space<vmem>>, vector<1x16x32xf32>
    %c0_5 = arith.constant 0 : index
    %c0_6 = arith.constant 0 : index
    %c0_7 = arith.constant 0 : index
    %3 = vector.load %arg5[%c0_5, %c0_6, %c0_7] : memref<1x16x128xf32, #tpu.memory_space<vmem>>, vector<1x16x32xf32>
    tpu.vector_store %arg5[%c0_5, %c0_6, %c0_7], %2 {strides = array<i32>} : memref<1x16x128xf32, #tpu.memory_space<vmem>>, vector<1x16x32xf32>,
    %c0_8 = arith.constant 0 : index
    %c0_9 = arith.constant 0 : index
    %c0_10 = arith.constant 0 : index
    %4 = vector.load %arg5[%c0_8, %c0_9, %c0_10] : memref<1x16x128xf32, #tpu.memory_space<vmem>>, vector<1x16x128xf32>
    %5 = arith.truncf %4 : vector<1x16x128xf32> to vector<1x16x128xbf16>
    %c0_11 = arith.constant 0 : index
    %c0_12 = arith.constant 0 : index
    %6 = vector.load %arg2[%c0_11, %c0_12] : memref<128x128xbf16, #tpu.memory_space<vmem>>, vector<128x128xbf16>
    %7 = vector.shape_cast %5 : vector<1x16x128xbf16> to vector<16x128xbf16>
    %cst_13 = arith.constant dense<0.000000e+00> : vector<16x128xf32>
    %8 = tpu.matmul %7, %6, %cst_13 {dimension_numbers = #tpu.dot_dimension_numbers<[1], [0], [0], [1], [0, 0, 1, 1], [], []>} : vector<16x128xbf16>, vector<128x128xbf16>, vector<16x128xf32> -> vector<16x128xf32>
    %9 = vector.shape_cast %8 : vector<16x128xf32> to vector<1x16x128xf32>
    %10 = arith.truncf %9 : vector<1x16x128xf32> to vector<1x16x128xbf16>
    "tpu.trace_start"() <{level = 10 : i32, message = "btd,bsd->bts"}> : () -> ()
    %cst_14 = arith.constant dense<0.000000e+00> : vector<1x16x16xf32>
    %11 = tpu.matmul %10, %5, %cst_14 {dimension_numbers = #tpu.dot_dimension_numbers<[2], [2], [1], [1], [0, 0, 0, 1, 1, 1], [0], [0]>} : vector<1x16x128xbf16>, vector<1x16x128xbf16>, vector<1x16x16xf32> -> vector<1x16x16xf32>
    "tpu.trace_stop"() : () -> ()
    %cst_15 = arith.constant 0.176776692 : f32
    %12 = vector.broadcast %cst_15 : f32 to vector<1x16x16xf32>
    %13 = arith.mulf %11, %12 : vector<1x16x16xf32>
    %cst_16 = arith.constant dense<0xFF800000> : vector<1x16xf32>
    %14 = vector.multi_reduction <maximumf>, %13, %cst_16 [2] : vector<1x16x16xf32> to vector<1x16xf32>
    %15 = vector.shape_cast %14 : vector<1x16xf32> to vector<1x16x1xf32>
    %16 = vector.broadcast %15 : vector<1x16x1xf32> to vector<1x16x16xf32>
    %17 = arith.subf %13, %16 : vector<1x16x16xf32>
    %18 = math.exp %17 : vector<1x16x16xf32>
    %cst_17 = arith.constant dense<0.000000e+00> : vector<1x16xf32>
    %19 = vector.multi_reduction <add>, %18, %cst_17 [2] : vector<1x16x16xf32> to vector<1x16xf32>
    %20 = vector.shape_cast %19 : vector<1x16xf32> to vector<1x16x1xf32>
    %21 = tpu.reciprocal %20 {approx = true} : vector<1x16x1xf32> -> vector<1x16x1xf32>
    %22 = vector.broadcast %21 : vector<1x16x1xf32> to vector<1x16x16xf32>
    %23 = arith.mulf %18, %22 : vector<1x16x16xf32>
    %24 = arith.truncf %23 : vector<1x16x16xf32> to vector<1x16x16xbf16>
    "tpu.trace_start"() <{level = 10 : i32, message = "bts,bsd->btd"}> : () -> ()
    %cst_18 = arith.constant dense<0.000000e+00> : vector<1x16x128xf32>
    %25 = tpu.matmul %24, %5, %cst_18 {dimension_numbers = #tpu.dot_dimension_numbers<[2], [1], [1], [2], [0, 0, 0, 1, 1, 2], [0], [0]>} : vector<1x16x16xbf16>, vector<1x16x128xbf16>, vector<1x16x128xf32> -> vector<1x16x128xf32>
    "tpu.trace_stop"() : () -> ()
    %c0_19 = arith.constant 0 : index
    %c0_20 = arith.constant 0 : index
    %26 = vector.load %arg3[%c0_19, %c0_20] : memref<1x128xf32, #tpu.memory_space<vmem>>, vector<1x128xf32>
    %27 = vector.shape_cast %26 : vector<1x128xf32> to vector<1x1x128xf32>
    %28 = vector.broadcast %27 : vector<1x1x128xf32> to vector<1x16x128xf32>
    %29 = arith.addf %25, %28 : vector<1x16x128xf32>
    %c0_21 = arith.constant 0 : index
    %c0_22 = arith.constant 0 : index
    %c0_23 = arith.constant 0 : index
    %30 = vector.load %arg4[%c0_21, %c0_22, %c0_23] : memref<1x16x128xf32, #tpu.memory_space<vmem>>, vector<1x16x128xf32>
    tpu.vector_store %arg4[%c0_21, %c0_22, %c0_23], %29 {strides = array<i32>} : memref<1x16x128xf32, #tpu.memory_space<vmem>>, vector<1x16x128xf32>,
    return
  }
  func.func @transform_0(%arg0: i32) -> (i32, i32, i32) {
    %c0_i32 = arith.constant 0 : i32
    %c0_i32_0 = arith.constant 0 : i32
    %c0_i32_1 = arith.constant 0 : i32
    return %arg0, %c0_i32, %c0_i32_0 : i32, i32, i32
  }
  func.func @transform_1(%arg0: i32) -> (i32, i32) {
    %c0_i32 = arith.constant 0 : i32
    %c0_i32_0 = arith.constant 0 : i32
    %c0_i32_1 = arith.constant 0 : i32
    return %c0_i32, %c0_i32_0 : i32, i32
  }
  func.func @transform_2(%arg0: i32) -> (i32, i32) {
    %c0_i32 = arith.constant 0 : i32
    %c0_i32_0 = arith.constant 0 : i32
    %c0_i32_1 = arith.constant 0 : i32
    return %c0_i32, %c0_i32_0 : i32, i32
  }
  func.func @transform_3(%arg0: i32) -> (i32, i32, i32) {
    %c0_i32 = arith.constant 0 : i32
    %c0_i32_0 = arith.constant 0 : i32
    %c0_i32_1 = arith.constant 0 : i32
    return %arg0, %c0_i32, %c0_i32_0 : i32, i32, i32
  }
}

</mosaic_0001>

<bundles_post_ra>
// kernel: tpu_custom_call.1
= control target key start
LH: loop header
LB: loop body
LE: loop exit
PB: predicated region body
PF: predicated region fallthrough
CT: control target
= control target key end

     0   :  { %8 = vsyncpa [#allocation4], 0  ;;  %s1069_s0 = inlined_call_operand.hbm [shape: f32[2,16,32], index: 0, kind: input, shape index: {}]   ;;  %s1070_s1 = inlined_call_operand.hbm [shape: bf16[128,128], index: 1, kind: input, shape index: {}]   ;;  %s1071_s2 = inlined_call_operand.vmem [shape: f32[1,128], index: 2, kind: input, shape index: {}]   ;;  %s1072_s3 = inlined_call_operand.hbm [shape: f32[2,16,128], index: 3, kind: output, shape index: {}]  }
   0x1   :  { %10 = vsyncpa [#allocation4 + $0x1], 0 }
   0x2   :  { %11 = vsyncpa [#allocation7], 0 }
   0x3   :  { %12 = vsyncpa [#allocation5], 0 }
   0x4   :  { %14 = vsyncpa [#allocation5 + $0x1], 0  ;;  %s853_s12 = smov 0   ;;  %s855_s13 = smov 0  }
   0x5   :  { %s857_s14 = smov 0   ;;  %s859_s15 = smov 0  }
   0x6 LB: > { %s874_s16 = sadd.s32 4294967295, %s820_s15   ;;  %s538_s17 = sadd.s32 4294967294, %s820_s15   ;;  %s820_s15 = sphi %s859_s15, %s1092_s15   ;;  %s816_s14 = sphi %s857_s14, %s1091_s14   ;;  %s812_s13 = sphi %s855_s13, %s1090_s13   ;;  %s808_s12 = sphi %s853_s12, %s1089_s12  }
   0x7   : > { %p40_p0 = scmp.ne.s32.totalorder %s812_s13, %s808_s12  ;;  %p1073_p1 = scmp.eq.s32.totalorder %s874_s16, 0 }
   0x8   : > { %p112_p3 = scmp.eq.s32.totalorder %s538_s17, 1  ;;  %p539_p5 = scmp.ge.s32.totalorder %s820_s15, 1 }
   0x9   : > { %p883_p4 = por %p1073_p1, %p40_p0  ;;  %p119_p7 = scmp.lt.s32.totalorder %s820_s15, 3 }
   0xa   : > { %p888_p6 = por %p112_p3, %p40_p0  ;;  %s822_s21 = smov [#allocation6]  }
   0xb   : > { %s1076_s18 = scalar_select %p883_p4, 1, 0 }
   0xc   : > { %s1077_s19 = scalar_select %p888_p6, 1, 0 }
   0xd   : > { %p893_p8 = pnand %p539_p5, %p119_p7  ;;  %s131_s22 = sshll.u32 %s822_s21, 4  ;;  %s897_s22 = int_to_ptr.vmem [resolvable:$true] %s131_s22 }
   0xe   : > { %s909_s24 = sadd.s32 1, %s820_s15   ;;  %s27_s25 = sadd.s32 1, %s816_s14 }
   0xf   : > { %s1078_s20 = scalar_select %p893_p8, 1, 0 }
  0x10   : > { %p619_p9 = pneg %p893_p8  ;;  %s24_s26 = ssub.s32 %s820_s15, %s909_s24 }
  0x11   : > { %s692_s29 = scalar_lea.hbm %s1070_s1, 1024 }
  0x12   : > { %p904_p11 = pnand %p619_p9, %p1073_p1  ;;  %p693_p12 = scmp.ne.s32.totalorder %s1070_s1, %s692_s29 }
  0x13   : > { %p699_p5 = scmp.lt.u32.totalorder %s692_s29, %s1070_s1 }
  0x14   : > { %p694_p13 = pneg %p904_p11 }
  0x16   : > { %p695_p0 = pnand %p694_p13, %p693_p12 }
  0x18   : > { %p696_p3 = pneg %p695_p0 }
  0x1a   : > { %p701_p7 = pnand %p699_p5, %p696_p3 }
  0x1c   : > { %704 = shalt.err (!%p701_p7)
}
  0x1d   : > { %s705_s7 = scalar_lea.vmem %s897_s22, 1024  ;;  %p713_p2 = scmp.lt.s32.totalorder %s897_s22, %s897_s22 }
  0x1e   : > { %p706_p9 = scmp.ne.s32.totalorder %s897_s22, %s705_s7  ;;  %p714_p6 = scmp.lt.s32.totalorder %s705_s7, %s705_s7 }
  0x20   : > { %p708_p10 = pnand %p706_p9, %p694_p13  ;;  %p715_p4 = por %p714_p6, %p713_p2 }
  0x22   : > { %p709_p1 = pneg %p708_p10 }
  0x24   : > { %p716_p8 = pnand %p715_p4, %p709_p1 }
  0x26   : > { %719 = shalt.err (!%p716_p8)
}
  0x27   : > { %s823_s8 = smov 64   ;;  %s824_s9 = smov 4  }
  0x28   : > { %622 = dma.hbm_to_vmem [thread:$0]  (!%p904_p11), %s1070_s1, 1024, %s897_s22, [#allocation7], %s823_s8, %s823_s8, %s824_s9  }
  0x29   : > { %p25_p2 = scmp.eq.s32.totalorder %s24_s26, 0  ;;  %p34_p1 = scmp.ne.s32.totalorder %s816_s14, %s812_s13 }
  0x2a   : > { %p35_p4 = scmp.eq.s32.totalorder %s820_s15, 0  ;;  %p632_p6 = scmp.lt.s32.totalorder %s820_s15, 2 }
  0x2b   : > { %s940_s17 = scalar_select %p25_p2, %s816_s14, %s27_s25  }
  0x2c   : > { %p36_p8 = por %p35_p4, %p34_p1  ;;  %p1080_p10 = scmp.eq.s32.totalorder %s874_s16, 1 }
  0x2d   : > { %s148_s27 = sand.u32 1, %s816_s14   ;;  %s564_s28 = sshll.u32 %s820_s15, 8 }
  0x2e   : > { %p944_p12 = por %p1080_p10, %p34_p1  ;;  %s542_s29 = sshll.u32 %s148_s27, 4 }
  0x2f   : > { %s953_s4 = scalar_lea.hbm %s1069_s0, %s564_s28  ;;  %s152_s22 = scalar_lea.vmem [#allocation3], %s542_s29 }
  0x30   : > { %s159_s25 = sshll.u32 %s152_s22, 4  ;;  %p955_p11 = pnand %p632_p6, %p36_p8  ;;  %s959_s25 = int_to_ptr.vmem [resolvable:$true] %s159_s25 }
  0x31   : > { %s961_s5 = scalar_lea.sflag [#allocation4], %s148_s27  ;;  %s720_s6 = scalar_lea.hbm %s953_s4, 256 }
  0x32   : > { %p721_p13 = scmp.ne.s32.totalorder %s953_s4, %s720_s6  ;;  %p722_p0 = pneg %p955_p11 }
  0x33   : > { %s725_s9 = scalar_lea.hbm %s1069_s0, 512  ;;  %p726_p7 = scmp.lt.u32.totalorder %s953_s4, %s1069_s0 }
  0x34   : > { %p723_p3 = pnand %p722_p0, %p721_p13  ;;  %p727_p9 = scmp.lt.u32.totalorder %s725_s9, %s720_s6 }
  0x35   : > { %p729_p1 = scmp.lt.u32.totalorder %s720_s6, %s953_s4 }
  0x36   : > { %p724_p5 = pneg %p723_p3  ;;  %p728_p2 = por %p727_p9, %p726_p7 }
  0x38   : > { %p730_p4 = por %p729_p1, %p728_p2 }
  0x3a   : > { %p731_p6 = pnand %p730_p4, %p724_p5 }
  0x3c   : > { %734 = shalt.err (!%p731_p6)
}
  0x3d   : > { %s735_s27 = scalar_lea.vmem %s959_s25, 256  ;;  %s825_s28 = smov [#allocation3]  }
  0x3e   : > { %p736_p8 = scmp.ne.s32.totalorder %s959_s25, %s735_s27  ;;  %s740_s29 = sshll.u32 %s825_s28, 4  ;;  %s741_s29 = int_to_ptr.vmem [resolvable:$false] %s740_s29 }
  0x3f   : > { %s742_s23 = scalar_lea.vmem %s741_s29, 512  ;;  %p743_p3 = scmp.lt.s32.totalorder %s959_s25, %s741_s29 }
  0x40   : > { %p738_p10 = pnand %p736_p8, %p722_p0  ;;  %p744_p7 = scmp.lt.s32.totalorder %s742_s23, %s735_s27 }
  0x42   : > { %p739_p13 = pneg %p738_p10  ;;  %p745_p9 = por %p744_p7, %p743_p3 }
  0x44   : > { %p746_p2 = pnand %p745_p9, %p739_p13 }
  0x46   : > { %749 = shalt.err (!%p746_p2)
}
  0x47   : > { %s826_s30 = smov 128   ;;  %s827_s22 = smov 8  }
  0x48   : > { %626 = dma.hbm_to_vmem [thread:$0]  (!%p955_p11), %s953_s4, 256, %s959_s25, %s961_s5, %s826_s30, %s826_s30, %s827_s22  }
  0x49   : > { %p1083_p0 = scmp.ne.s32.totalorder %s1078_s20, 0 }
  0x4a   : > { %s992_s6 = sand.u32 (!%p1083_p0), 1, %s812_s13   ;;  %p1084_p5 = scmp.ne.s32.totalorder (!%p1083_p0), %s1076_s18, 0 }
  0x4b   : > { %171 = sbr.rel (%p1083_p0) target bundleno = 1101 (0x44d), region = 32  ;;  %s546_s7 = sshll.u32 (!%p1083_p0), %s992_s6, 4 }
  0x4c   : > { %s174_s8 = scalar_lea.sflag (!%p1083_p0), [#allocation4], %s992_s6  ;;  %s177_s9 = scalar_lea.vmem (!%p1083_p0), [#allocation3], %s546_s7 }
  0x52   : > { %795 = dma.done.wait (%p1084_p5), %s174_s8, 256  }
  0x53   : > { %797 = vsyncadd (%p1084_p5), %s174_s8, 4294967040  ;;  %p1085_p11 = scmp.eq.s32.totalorder %s874_s16, 0 }
  0x55   : > { %799 = dma.done.wait (%p1085_p11), [#allocation7], 1024   ;;  %p1086_p1 = pmov %p1085_p11 }
  0x56   : > { %v828_v0 = vmov 0.0   ;;  %vm829_vm0 = vmmov 0   ;;  %v676_v1 = vld [vmem:[#allocation6] sm:$0xff]   ;;  %v677_v2 = vld [vmem:[#allocation6 + $0x8] sm:$0xff]   ;;  %v678_v3 = vld [vmem:[#allocation6 + $0x10] sm:$0xff]   ;;  %vm209_vm1 = vcmask 261120  }
  0x57   : > { %801 = vsyncadd (%p1086_p1), [#allocation7], 4294966272  ;;  %579 = vmatprep.subr.bf16.mxu0 %v828_v0  ;;  %205 = vst [vmem:[#allocation2] sm:$0xff] %v828_v0  ;;  %595 = vmatprep.mubr.msk.bf16.mxu0 %vm829_vm0, %v828_v0  ;;  %v207_v4 = vld [vmem:[%s177_s9] sm:$0xff]  ;;  %v208_v5 = vld [vmem:[%s177_s9 + $0x8] sm:$0xff]  ;;  %vm364_vm2 = vcmask 130048  }
  0x58   : > { %206 = vst [vmem:[#allocation2 + $0x8] sm:$0xff] %v828_v0  ;;  %599 = vmatprep.subr.bf16.mxu1 %v828_v0  ;;  %601 = vmatprep.mubr.msk.bf16.mxu1 %vm829_vm0, %v828_v0  ;;  %210 = vst.msk [vmem:[#allocation2] sm:$0xff] %vm209_vm1, %v207_v4  ;;  %v679_v6 = vld [vmem:[#allocation6 + $0x18] sm:$0xff]   ;;  %v680_v7 = vld [vmem:[#allocation6 + $0x20] sm:$0xff]   ;;  %s203_s4 = scalar_lea.vmem [#allocation8], %s546_s7  ;;  %s565_s26 = sshll.u32 %s874_s16, 8 }
  0x59   : > { %580 = vmatpush3.bf16.msra.mxu0 %v676_v1  ;;  %211 = vst.msk [vmem:[#allocation2 + $0x8] sm:$0xff] %vm209_vm1, %v208_v5  ;;  %v681_v11 = vld [vmem:[#allocation6 + $0x28] sm:$0xff]   ;;  %v682_v12 = vld [vmem:[#allocation6 + $0x30] sm:$0xff]   ;;  %v683_v13 = vld [vmem:[#allocation6 + $0x38] sm:$0xff]   ;;  %s455_s25 = sshll.u32 %s203_s4, 4  ;;  %s1025_s11 = scalar_lea.hbm %s1072_s3, %s565_s26  ;;  %s1020_s25 = int_to_ptr.vmem [resolvable:$true] %s455_s25 }
  0x5a   : > { %581 = vmatprep.subr.bf16.mxu0 %v828_v0  ;;  %v557_v44 = vld [vmem:[%s1071_s2] ss:$0 sm:$0xff]  ;;  %s442_s27 = scalar_lea.sflag [#allocation5], %s992_s6  ;;  %s750_s16 = scalar_lea.vmem %s1020_s25, 256 }
  0x5b   : > { %p751_p4 = scmp.ne.s32.totalorder %s1020_s25, %s750_s16  ;;  %s830_s28 = smov [#allocation8]  }
  0x5c   : > { %s754_s29 = sshll.u32 %s830_s28, 4  ;;  %s755_s29 = int_to_ptr.vmem [resolvable:$false] %s754_s29 }
  0x5d   : > { %582 = vmatpush3.bf16.msra.mxu0 %v677_v2  ;;  %p752_p6 = pnand %p751_p4, %p944_p12  ;;  %s756_s23 = scalar_lea.vmem %s755_s29, 512 }
  0x5e   : > { %583 = vmatprep.subr.bf16.mxu0 %v828_v0  ;;  %p757_p10 = scmp.lt.s32.totalorder %s1020_s25, %s755_s29  ;;  %p758_p13 = scmp.lt.s32.totalorder %s756_s23, %s750_s16 }
  0x5f   : > { %v212_v8 = vld [vmem:[#allocation2] sm:$0xff]  ;;  %p753_p8 = pneg %p752_p6 }
  0x60   : > { %v213_v9 = vld [vmem:[#allocation2 + $0x8] sm:$0xff]  ;;  %p759_p3 = por %p758_p13, %p757_p10 }
  0x61   : > { %584 = vmatpush3.bf16.msra.mxu0 %v678_v3  ;;  %v214_v10 = vpack.c.bf16 %v213_v9, %v212_v8 }
  0x62   : > { %585 = vmatprep.subr.bf16.mxu0 %v828_v0  ;;  %p760_p7 = pnand %p759_p3, %p753_p8 }
  0x63   : > { %600 = vmatpush3.bf16.xpose.msra.mxu1 %v214_v10 }
  0x64   : > { %605 = vmatprep.subr.bf16.mxu1 %v828_v0 }
  0x65   : > { %586 = vmatpush3.bf16.msra.mxu0 %v679_v6 }
  0x66   : > { %587 = vmatprep.subr.bf16.mxu0 %v828_v0 }
  0x69   : > { %588 = vmatpush3.bf16.msra.mxu0 %v680_v7 }
  0x6a   : > { %589 = vmatprep.subr.bf16.mxu0 %v828_v0 }
  0x6d   : > { %590 = vmatpush3.bf16.msra.mxu0 %v681_v11 }
  0x6e   : > { %591 = vmatprep.subr.bf16.mxu0 %v828_v0 }
  0x71   : > { %592 = vmatpush3.bf16.msra.mxu0 %v682_v12 }
  0x72   : > { %593 = vmatprep.subr.bf16.mxu0 %v828_v0 }
  0x75   : > { %594 = vmatpush3.bf16.msra.mxu0 %v683_v13 }
  0x78   : > { %596 = vmatmul.mubr.bf16.vlgmr.msra.gmra.mrb[0].mxu0 %v214_v10 }
 0x14b   : > { %v313_v14 = vpop.f32.mrb[0].mxu0 }
 0x14c   : > { %v597_v15 = vpop.f32.mrb[1].mxu0 }
 0x14d   : > { %v316_v16 = vpop.f32.mrb[2].mxu0 }
 0x14e   : > { %v320_v17 = vpack.c.bf16 %v316_v16, %v313_v14  ;;  %v598_v18 = vpop.f32.mrb[3].mxu0 }
 0x150   : > { %602 = vmatmul.mubr.bf16.vlgmr.msra.gmra.mrb[0].mxu1 %v320_v17 }
 0x151   : > { %606 = vmatpush3.bf16.msra.mxu1 %v214_v10  ;;  %607 = vmatprep.mubr.msk.bf16.mxu1 %vm829_vm0, %v828_v0 }
 0x223   : > { %v355_v19 = vpop.f32.mrb[0].mxu1 }
 0x224   : > { %v362_v20 = vmul.f32 0.17677669, %v355_v19  ;;  %v603_v21 = vpop.f32.mrb[1].mxu1 }
 0x225   : > { %v358_v22 = vpop.f32.mrb[2].mxu1 }
 0x226   : > { %v363_v23 = vmul.f32 0.17677669, %v358_v22  ;;  %v604_v24 = vpop.f32.mrb[3].mxu1  ;;  %v365_v25 = vsel %vm364_vm2, %v362_v20, -inf }
 0x227   : > { %366 = vmax.xlane.f32.xlu0 %v365_v25 }
 0x228   : > { %v368_v26 = vsel %vm364_vm2, %v363_v23, -inf }
 0x22b   : > { %369 = vmax.xlane.f32.xlu0 %v368_v26 }
 0x2b4   : > { %v367_v27 = vpop.xlane.xlu0 %366 }
 0x2b5   : > { %v371_v28 = vsub.f32 %v362_v20, %v367_v27 }
 0x2b7   : > { %v373_v29 = vmul.f32 1.442695, %v371_v28 }
 0x2b8   : > { %v370_v30 = vpop.xlane.xlu0 %369 }
 0x2b9   : > { %684 = vpow2.f32 %v373_v29  ;;  %v372_v31 = vsub.f32 %v363_v23, %v370_v30 }
 0x2bb   : > { %v375_v32 = vmul.f32 1.442695, %v372_v31 }
 0x2bd   : > { %686 = vpow2.f32 %v375_v32 }
 0x2c3   : > { %v685_v33 = vpop.eup %684 }
 0x2c4   : > { %v377_v34 = vsel %vm364_vm2, %v685_v33, 0.0 }
 0x2c5   : > { %378 = vadd.xlane.f32.xlu1 %v377_v34 }
 0x2c7   : > { %v687_v35 = vpop.eup %686 }
 0x2c8   : > { %v380_v36 = vsel %vm364_vm2, %v687_v35, 0.0 }
 0x2c9   : > { %381 = vadd.xlane.f32.xlu1 %v380_v36 }
 0x352   : > { %v379_v37 = vpop.xlane.xlu1 %378 }
 0x353   : > { %688 = vrcp.f32 %v379_v37 }
 0x356   : > { %v382_v38 = vpop.xlane.xlu1 %381 }
 0x357   : > { %690 = vrcp.f32 %v382_v38 }
 0x35d   : > { %v689_v39 = vpop.eup %688 }
 0x35e   : > { %v385_v41 = vmul.f32 %v689_v39, %v685_v33 }
 0x361   : > { %v691_v40 = vpop.eup %690 }
 0x362   : > { %v386_v42 = vmul.f32 %v691_v40, %v687_v35 }
 0x364   : > { %v387_v43 = vpack.c.bf16 %v386_v42, %v385_v41 }
 0x366   : > { %608 = vmatmul.mubr.msk.bf16.vlgmr.msra.gmra.mrb[4].mxu1 %vm364_vm2, %v387_v43 }
 0x439   : > { %v432_v45 = vpop.f32.mrb[4].mxu1 }
 0x43a   : > { %v433_v46 = vadd.f32 %v557_v44, %v432_v45  ;;  %v609_v47 = vpop.f32.mrb[5].mxu1 }
 0x43b   : > { %v435_v48 = vpop.f32.mrb[6].mxu1 }
 0x43c   : > { %439 = vst [vmem:[%s203_s4] sm:$0xff] %v433_v46  ;;  %v436_v49 = vadd.f32 %v557_v44, %v435_v48  ;;  %v610_v50 = vpop.f32.mrb[7].mxu1 }
 0x43e   : > { %440 = vst [vmem:[%s203_s4 + $0x8] sm:$0xff] %v436_v49 }
 0x43f   : > { %763 = shalt.err (!%p760_p7)
}
 0x440   : > { %s764_s30 = scalar_lea.hbm %s1025_s11, 256  ;;  %s768_s8 = scalar_lea.hbm %s1072_s3, 512 }
 0x441   : > { %p765_p9 = scmp.ne.s32.totalorder %s1025_s11, %s764_s30  ;;  %p769_p5 = scmp.lt.u32.totalorder %s1025_s11, %s1072_s3 }
 0x442   : > { %p770_p11 = scmp.lt.u32.totalorder %s768_s8, %s764_s30  ;;  %p772_p4 = scmp.lt.u32.totalorder %s764_s30, %s1025_s11 }
 0x443   : > { %p766_p2 = pnand %p765_p9, %p944_p12 }
 0x444   : > { %p771_p1 = por %p770_p11, %p769_p5 }
 0x445   : > { %p767_p0 = pneg %p766_p2 }
 0x446   : > { %p773_p6 = por %p772_p4, %p771_p1 }
 0x448   : > { %p774_p8 = pnand %p773_p6, %p767_p0 }
 0x44a   : > { %777 = shalt.err (!%p774_p8)
}
 0x44b   : > { %s831_s20 = smov 128   ;;  %s832_s4 = smov 8  }
 0x44c   : > { %617 = dma.vmem_to_hbm [thread:$0]  (%p944_p12), %s1020_s25, 256, %s1025_s11, %s442_s27, %s831_s20, %s831_s20, %s832_s4  }
 0x44d PF: > { %s470_s26 = sand.u32 1, %s808_s12   ;;  %p1087_p10 = scmp.ne.s32.totalorder %s1077_s19, 0 }
 0x44e   : > { %p1088_p13 = scmp.ge.s32.totalorder %s820_s15, 2  ;;  %s471_s5 = scalar_lea.sflag [#allocation5], %s470_s26 }
 0x450   : > { %p628_p3 = pnand %p1088_p13, %p1087_p10 }
 0x452   : > { %803 = dma.done.wait (!%p628_p3), %s471_s5, 256  }
 0x453   : > { %805 = vsyncadd (!%p628_p3), %s471_s5, 4294967040  ;;  %p17_p7 = scmp.ge.s32.totalorder %s909_s24, 4   ;;  %s1089_s12 = smov %s812_s13 }
 0x454   : > { %s1090_s13 = smov %s816_s14  ;;  %s1091_s14 = smov %s940_s17 }
 0x455   : > { %s1092_s15 = smov %s909_s24  ;;  %19 = sbr.rel (!%p17_p7) target bundleno = 6 (0x6), region = 81 }
 0x45c   :  { %476 = vsyncpa [#allocation4], 1 }
 0x45d   :  { %478 = vsyncpa [#allocation4 + $0x1], 1 }
 0x45e   :  { %479 = vsyncpa [#allocation7], 1 }
 0x45f   :  { %480 = vsyncpa [#allocation5], 1 }
 0x460   :  { %482 = vsyncpa [#allocation5 + $0x1], 1 }

</bundles_post_ra>
